<compile_context>
chip_gen: v7x
topology: tpu7x:2x2x1
jax: 0.10.0
libtpu: 0.0.40
codegen_flags: <defaults>
</compile_context>

<pallas_src>
import numpy as np
import jax
import jax.numpy as jnp
from jax import lax
from jax.experimental import pallas as pl
from jax.experimental.pallas import tpu as pltpu

_LN_EPS = 1e-5


def _encoder_mlp_kernel(x_ref, db_ref, w1_ref, w2_ref, b2_ref,
                        gamma_ref, beta_ref, w3_ref, b3_ref, o_ref):
    """x_ref: [Mt, input_dim] tile of flattened (batch*object) rows.
    db_ref: [Mt, H] per-row fc1 bias (descriptor part of fc1 + b1).
    Weights/biases use constant index_maps and stay VMEM-resident."""
    x = x_ref[...]

    # fc1 (observation columns) + folded descriptor bias, ReLU
    h = jnp.dot(x, w1_ref[...], preferred_element_type=jnp.float32) + db_ref[...]
    h = jnp.maximum(h, 0.0)

    # fc2
    h = jnp.dot(h, w2_ref[...], preferred_element_type=jnp.float32) + b2_ref[...]

    # LayerNorm over the hidden (lane) axis: biased variance, eps inside rsqrt.
    mu = jnp.mean(h, axis=-1, keepdims=True)
    d = h - mu
    var = jnp.mean(d * d, axis=-1, keepdims=True)
    h = d * lax.rsqrt(var + _LN_EPS)
    h = h * gamma_ref[...] + beta_ref[...]

    # ReLU + fc3
    h = jnp.maximum(h, 0.0)
    o_ref[...] = (jnp.dot(h, w3_ref[...], preferred_element_type=jnp.float32)
                  + b3_ref[...]).astype(o_ref.dtype)


def _pick_row_tile(M):
    if M <= 64:
        # One tile; block equals the full array dim so the (8,128) rule holds.
        return M
    # >= 2 tiles (keeps both v7x TensorCores busy via the "parallel" grid axis),
    # sublane-aligned, capped at 2048 rows (< 1.5 MiB total VMEM at these dims).
    return min(2048, ((M + 15) // 16) * 8)


def encoder_mlp_forward(ins, task_desc, low_desc, params):
    """ins: [B, K, input_dim]; task_desc: [B, Dt]; low_desc: [B, Dl]
    -> [B, K, output_dim] float32."""
    w1, b1, w2, b2, gamma, beta, w3, b3 = params
    B, K, input_dim = ins.shape
    Dt = task_desc.shape[-1]
    Dl = low_desc.shape[-1]
    H = w1.shape[1]
    P = w3.shape[1]
    assert w1.shape[0] == input_dim + Dt + Dl

    # Fold the per-sequence descriptors (and b1) into a per-batch fc1 bias.
    w1_x = w1[:input_dim]
    desc_bias = (task_desc @ w1[input_dim:input_dim + Dt]
                 + low_desc @ w1[input_dim + Dt:]
                 + b1)                                             # [B, H] (tiny)

    M = B * K
    x = ins.reshape(M, input_dim)                                  # free view
    # Only remaining expansion: H-wide per-row bias (smaller than the old
    # [M, Din] concat, and the pad/slice copies are gone entirely).
    db_rows = jnp.broadcast_to(desc_bias[:, None, :], (B, K, H)).reshape(M, H)

    Mt = _pick_row_tile(M)
    grid = (pl.cdiv(M, Mt),)

    out = pl.pallas_call(
        _encoder_mlp_kernel,
        out_shape=jax.ShapeDtypeStruct((M, P), jnp.float32),
        grid_spec=pl.GridSpec(
            grid=grid,
            in_specs=[
                pl.BlockSpec((Mt, input_dim), lambda i: (i, 0)),   # x rows
                pl.BlockSpec((Mt, H), lambda i: (i, 0)),           # per-row bias
                pl.BlockSpec((input_dim, H), lambda i: (0, 0)),    # W1 (obs part)
                pl.BlockSpec((H, H), lambda i: (0, 0)),            # W2
                pl.BlockSpec((1, H), lambda i: (0, 0)),            # b2
                pl.BlockSpec((1, H), lambda i: (0, 0)),            # gamma
                pl.BlockSpec((1, H), lambda i: (0, 0)),            # beta
                pl.BlockSpec((H, P), lambda i: (0, 0)),            # W3
                pl.BlockSpec((1, P), lambda i: (0, 0)),            # b3
            ],
            out_specs=pl.BlockSpec((Mt, P), lambda i: (i, 0)),
        ),
        compiler_params=pltpu.CompilerParams(
            dimension_semantics=("parallel",)),
    )(x, db_rows, w1_x, w2, b2, gamma, beta, w3, b3)

    return out.reshape(B, K, P)


def init_params(key, input_dim, hidden_dim, output_dim, language_dim_low, language_dim_high):
    """Deterministic synthetic parameters (weights pre-transposed to [in, out])."""
    Din = input_dim + language_dim_low + language_dim_high
    keys = jax.random.split(key, 8)

    def uniform(k, shape, fan_in):
        bound = 1.0 / np.sqrt(fan_in)
        return jax.random.uniform(k, shape, jnp.float32, -bound, bound)

    w1 = uniform(keys[0], (Din, hidden_dim), Din)
    b1 = uniform(keys[1], (1, hidden_dim), Din)
    w2 = uniform(keys[2], (hidden_dim, hidden_dim), hidden_dim)
    b2 = uniform(keys[3], (1, hidden_dim), hidden_dim)
    gamma = 1.0 + 0.1 * jax.random.normal(keys[4], (1, hidden_dim), jnp.float32)
    beta = 0.1 * jax.random.normal(keys[5], (1, hidden_dim), jnp.float32)
    w3 = uniform(keys[6], (hidden_dim, output_dim), hidden_dim)
    b3 = uniform(keys[7], (1, output_dim), hidden_dim)
    return (w1, b1, w2, b2, gamma, beta, w3, b3)


def reference_forward(ins, task_desc, low_desc, params):
    """Pure-JAX reference mirroring the PyTorch module (concat path)."""
    w1, b1, w2, b2, gamma, beta, w3, b3 = params
    B, K, _ = ins.shape
    task_b = jnp.broadcast_to(task_desc[:, None, :], (B, K, task_desc.shape[-1]))
    low_b = jnp.broadcast_to(low_desc[:, None, :], (B, K, low_desc.shape[-1]))
    h = jnp.concatenate([ins, task_b, low_b], axis=-1)
    h = jax.nn.relu(h @ w1 + b1[0])
    h2 = h @ w2 + b2[0]
    mu = h2.mean(-1, keepdims=True)
    var = ((h2 - mu) ** 2).mean(-1, keepdims=True)
    h2 = (h2 - mu) / jnp.sqrt(var + _LN_EPS) * gamma[0] + beta[0]
    h2 = jax.nn.relu(h2)
    return h2 @ w3 + b3[0]


if __name__ == "__main__":
    input_dim = 32
    hidden_dim = 32
    output_dim = 32
    language_dim_low = 8
    language_dim_high = 8

    key = jax.random.PRNGKey(0)
    k_p, k_data = jax.random.split(key)
    params = init_params(k_p, input_dim, hidden_dim, output_dim,
                         language_dim_low, language_dim_high)

    # (batch, num_objects): small single-tile case, plus a multi-tile case that
    # exercises the cdiv grid with a partial (masked) last block.
    for batch, num_objects in ((2, 4), (34, 4)):
        k_x, k_t, k_l, k_data = jax.random.split(k_data, 4)
        ins = jax.random.normal(k_x, (batch, num_objects, input_dim), dtype=jnp.float32)
        task_desc = jax.random.normal(k_t, (batch, language_dim_high), dtype=jnp.float32)
        low_desc = jax.random.normal(k_l, (batch, language_dim_low), dtype=jnp.float32)

        out = jax.block_until_ready(
            encoder_mlp_forward(ins, task_desc, low_desc, params))
        ref = reference_forward(ins, task_desc, low_desc, params)
        assert out.shape == (batch, num_objects, output_dim)
        np.testing.assert_allclose(np.asarray(out), np.asarray(ref),
                                   rtol=1e-4, atol=1e-5)

    print("KERNEL_OK")
</pallas_src>

<mosaic_0001>
module attributes {stable_mosaic.version = 11 : i64} {
  func.func @_encoder_mlp_kernel(%arg0: i32, %arg1: memref<8x32xf32, #tpu.memory_space<vmem>>, %arg2: memref<8x32xf32, #tpu.memory_space<vmem>>, %arg3: memref<32x32xf32, #tpu.memory_space<vmem>>, %arg4: memref<32x32xf32, #tpu.memory_space<vmem>>, %arg5: memref<1x32xf32, #tpu.memory_space<vmem>>, %arg6: memref<1x32xf32, #tpu.memory_space<vmem>>, %arg7: memref<1x32xf32, #tpu.memory_space<vmem>>, %arg8: memref<32x32xf32, #tpu.memory_space<vmem>>, %arg9: memref<1x32xf32, #tpu.memory_space<vmem>>, %arg10: memref<8x32xf32, #tpu.memory_space<vmem>>) attributes {dimension_semantics = [#tpu.dimension_semantics<parallel>], iteration_bounds = array<i64: 1>, scalar_prefetch = 0 : i64, scratch_operands = 0 : i64, tpu.core_type = #tpu.core_type<tc>, window_params = [{transform_indices = @transform_0, window_bounds = array<i64: 8, 32>}, {transform_indices = @transform_1, window_bounds = array<i64: 8, 32>}, {pipeline_mode = #tpu.pipeline_mode<synchronous>, transform_indices = @transform_2, window_bounds = array<i64: 32, 32>}, {pipeline_mode = #tpu.pipeline_mode<synchronous>, transform_indices = @transform_3, window_bounds = array<i64: 32, 32>}, {pipeline_mode = #tpu.pipeline_mode<synchronous>, transform_indices = @transform_4, window_bounds = array<i64: 1, 32>}, {pipeline_mode = #tpu.pipeline_mode<synchronous>, transform_indices = @transform_5, window_bounds = array<i64: 1, 32>}, {pipeline_mode = #tpu.pipeline_mode<synchronous>, transform_indices = @transform_6, window_bounds = array<i64: 1, 32>}, {pipeline_mode = #tpu.pipeline_mode<synchronous>, transform_indices = @transform_7, window_bounds = array<i64: 32, 32>}, {pipeline_mode = #tpu.pipeline_mode<synchronous>, transform_indices = @transform_8, window_bounds = array<i64: 1, 32>}, {transform_indices = @transform_9, window_bounds = array<i64: 8, 32>}]} {
    %c0 = arith.constant 0 : index
    %c0_0 = arith.constant 0 : index
    %0 = vector.load %arg1[%c0, %c0_0] : memref<8x32xf32, #tpu.memory_space<vmem>>, vector<8x32xf32>
    %c0_1 = arith.constant 0 : index
    %c0_2 = arith.constant 0 : index
    %1 = vector.load %arg3[%c0_1, %c0_2] : memref<32x32xf32, #tpu.memory_space<vmem>>, vector<32x32xf32>
    %cst = arith.constant dense<0.000000e+00> : vector<8x32xf32>
    %2 = tpu.matmul %0, %1, %cst {dimension_numbers = #tpu.dot_dimension_numbers<[1], [0], [0], [1], [0, 0, 1, 1], [], []>} : vector<8x32xf32>, vector<32x32xf32>, vector<8x32xf32> -> vector<8x32xf32>
    %c0_3 = arith.constant 0 : index
    %c0_4 = arith.constant 0 : index
    %3 = vector.load %arg2[%c0_3, %c0_4] : memref<8x32xf32, #tpu.memory_space<vmem>>, vector<8x32xf32>
    %4 = arith.addf %2, %3 : vector<8x32xf32>
    %cst_5 = arith.constant 0.000000e+00 : f32
    %5 = vector.broadcast %cst_5 : f32 to vector<8x32xf32>
    %6 = arith.maximumf %4, %5 : vector<8x32xf32>
    %c0_6 = arith.constant 0 : index
    %c0_7 = arith.constant 0 : index
    %7 = vector.load %arg4[%c0_6, %c0_7] : memref<32x32xf32, #tpu.memory_space<vmem>>, vector<32x32xf32>
    %cst_8 = arith.constant dense<0.000000e+00> : vector<8x32xf32>
    %8 = tpu.matmul %6, %7, %cst_8 {dimension_numbers = #tpu.dot_dimension_numbers<[1], [0], [0], [1], [0, 0, 1, 1], [], []>} : vector<8x32xf32>, vector<32x32xf32>, vector<8x32xf32> -> vector<8x32xf32>
    %c0_9 = arith.constant 0 : index
    %c0_10 = arith.constant 0 : index
    %9 = vector.load %arg5[%c0_9, %c0_10] : memref<1x32xf32, #tpu.memory_space<vmem>>, vector<1x32xf32>
    %10 = vector.broadcast %9 : vector<1x32xf32> to vector<8x32xf32>
    %11 = arith.addf %8, %10 : vector<8x32xf32>
    %cst_11 = arith.constant dense<0.000000e+00> : vector<8xf32>
    %12 = vector.multi_reduction <add>, %11, %cst_11 [1] : vector<8x32xf32> to vector<8xf32>
    %13 = vector.shape_cast %12 : vector<8xf32> to vector<8x1xf32>
    %cst_12 = arith.constant 3.200000e+01 : f32
    %14 = vector.broadcast %cst_12 : f32 to vector<8x1xf32>
    %15 = arith.divf %13, %14 : vector<8x1xf32>
    %16 = vector.broadcast %15 : vector<8x1xf32> to vector<8x32xf32>
    %17 = arith.subf %11, %16 : vector<8x32xf32>
    %18 = arith.mulf %17, %17 : vector<8x32xf32>
    %cst_13 = arith.constant dense<0.000000e+00> : vector<8xf32>
    %19 = vector.multi_reduction <add>, %18, %cst_13 [1] : vector<8x32xf32> to vector<8xf32>
    %20 = vector.shape_cast %19 : vector<8xf32> to vector<8x1xf32>
    %cst_14 = arith.constant 3.200000e+01 : f32
    %21 = vector.broadcast %cst_14 : f32 to vector<8x1xf32>
    %22 = arith.divf %20, %21 : vector<8x1xf32>
    %cst_15 = arith.constant 9.99999974E-6 : f32
    %23 = vector.broadcast %cst_15 : f32 to vector<8x1xf32>
    %24 = arith.addf %22, %23 : vector<8x1xf32>
    %25 = math.rsqrt %24 : vector<8x1xf32>
    %26 = vector.broadcast %25 : vector<8x1xf32> to vector<8x32xf32>
    %27 = arith.mulf %17, %26 : vector<8x32xf32>
    %c0_16 = arith.constant 0 : index
    %c0_17 = arith.constant 0 : index
    %28 = vector.load %arg6[%c0_16, %c0_17] : memref<1x32xf32, #tpu.memory_space<vmem>>, vector<1x32xf32>
    %29 = vector.broadcast %28 : vector<1x32xf32> to vector<8x32xf32>
    %30 = arith.mulf %27, %29 : vector<8x32xf32>
    %c0_18 = arith.constant 0 : index
    %c0_19 = arith.constant 0 : index
    %31 = vector.load %arg7[%c0_18, %c0_19] : memref<1x32xf32, #tpu.memory_space<vmem>>, vector<1x32xf32>
    %32 = vector.broadcast %31 : vector<1x32xf32> to vector<8x32xf32>
    %33 = arith.addf %30, %32 : vector<8x32xf32>
    %cst_20 = arith.constant 0.000000e+00 : f32
    %34 = vector.broadcast %cst_20 : f32 to vector<8x32xf32>
    %35 = arith.maximumf %33, %34 : vector<8x32xf32>
    %c0_21 = arith.constant 0 : index
    %c0_22 = arith.constant 0 : index
    %36 = vector.load %arg8[%c0_21, %c0_22] : memref<32x32xf32, #tpu.memory_space<vmem>>, vector<32x32xf32>
    %cst_23 = arith.constant dense<0.000000e+00> : vector<8x32xf32>
    %37 = tpu.matmul %35, %36, %cst_23 {dimension_numbers = #tpu.dot_dimension_numbers<[1], [0], [0], [1], [0, 0, 1, 1], [], []>} : vector<8x32xf32>, vector<32x32xf32>, vector<8x32xf32> -> vector<8x32xf32>
    %c0_24 = arith.constant 0 : index
    %c0_25 = arith.constant 0 : index
    %38 = vector.load %arg9[%c0_24, %c0_25] : memref<1x32xf32, #tpu.memory_space<vmem>>, vector<1x32xf32>
    %39 = vector.broadcast %38 : vector<1x32xf32> to vector<8x32xf32>
    %40 = arith.addf %37, %39 : vector<8x32xf32>
    %c0_26 = arith.constant 0 : index
    %c0_27 = arith.constant 0 : index
    %41 = vector.load %arg10[%c0_26, %c0_27] : memref<8x32xf32, #tpu.memory_space<vmem>>, vector<8x32xf32>
    tpu.vector_store %arg10[%c0_26, %c0_27], %40 {strides = array<i32>} : memref<8x32xf32, #tpu.memory_space<vmem>>, vector<8x32xf32>,
    return
  }
  func.func @transform_0(%arg0: i32) -> (i32, i32) {
    %c0_i32 = arith.constant 0 : i32
    %c0_i32_0 = arith.constant 0 : i32
    return %arg0, %c0_i32 : i32, i32
  }
  func.func @transform_1(%arg0: i32) -> (i32, i32) {
    %c0_i32 = arith.constant 0 : i32
    %c0_i32_0 = arith.constant 0 : i32
    return %arg0, %c0_i32 : i32, i32
  }
  func.func @transform_2(%arg0: i32) -> (i32, i32) {
    %c0_i32 = arith.constant 0 : i32
    %c0_i32_0 = arith.constant 0 : i32
    %c0_i32_1 = arith.constant 0 : i32
    return %c0_i32, %c0_i32_0 : i32, i32
  }
  func.func @transform_3(%arg0: i32) -> (i32, i32) {
    %c0_i32 = arith.constant 0 : i32
    %c0_i32_0 = arith.constant 0 : i32
    %c0_i32_1 = arith.constant 0 : i32
    return %c0_i32, %c0_i32_0 : i32, i32
  }
  func.func @transform_4(%arg0: i32) -> (i32, i32) {
    %c0_i32 = arith.constant 0 : i32
    %c0_i32_0 = arith.constant 0 : i32
    %c0_i32_1 = arith.constant 0 : i32
    return %c0_i32, %c0_i32_0 : i32, i32
  }
  func.func @transform_5(%arg0: i32) -> (i32, i32) {
    %c0_i32 = arith.constant 0 : i32
    %c0_i32_0 = arith.constant 0 : i32
    %c0_i32_1 = arith.constant 0 : i32
    return %c0_i32, %c0_i32_0 : i32, i32
  }
  func.func @transform_6(%arg0: i32) -> (i32, i32) {
    %c0_i32 = arith.constant 0 : i32
    %c0_i32_0 = arith.constant 0 : i32
    %c0_i32_1 = arith.constant 0 : i32
    return %c0_i32, %c0_i32_0 : i32, i32
  }
  func.func @transform_7(%arg0: i32) -> (i32, i32) {
    %c0_i32 = arith.constant 0 : i32
    %c0_i32_0 = arith.constant 0 : i32
    %c0_i32_1 = arith.constant 0 : i32
    return %c0_i32, %c0_i32_0 : i32, i32
  }
  func.func @transform_8(%arg0: i32) -> (i32, i32) {
    %c0_i32 = arith.constant 0 : i32
    %c0_i32_0 = arith.constant 0 : i32
    %c0_i32_1 = arith.constant 0 : i32
    return %c0_i32, %c0_i32_0 : i32, i32
  }
  func.func @transform_9(%arg0: i32) -> (i32, i32) {
    %c0_i32 = arith.constant 0 : i32
    %c0_i32_0 = arith.constant 0 : i32
    return %arg0, %c0_i32 : i32, i32
  }
}

</mosaic_0001>

<bundles_post_ra>
// kernel: tpu_custom_call.1
= control target key start
LH: loop header
LB: loop body
LE: loop exit
PB: predicated region body
PF: predicated region fallthrough
CT: control target
= control target key end

     0   :  { %14 = vsyncpa [#allocation3], 0  ;;  %s784_s0 = inlined_call_operand.hbm [shape: f32[8,32], index: 0, kind: input, shape index: {}]   ;;  %s785_s1 = inlined_call_operand.hbm [shape: f32[8,32], index: 1, kind: input, shape index: {}]   ;;  %s786_s2 = inlined_call_operand.hbm [shape: f32[32,32], index: 2, kind: input, shape index: {}]   ;;  %s787_s3 = inlined_call_operand.hbm [shape: f32[32,32], index: 3, kind: input, shape index: {}]   ;;  %s788_s4 = inlined_call_operand.vmem [shape: f32[1,32], index: 4, kind: input, shape index: {}]   ;;  %s789_s5 = inlined_call_operand.vmem [shape: f32[1,32], index: 5, kind: input, shape index: {}]   ;;  %s790_s6 = inlined_call_operand.vmem [shape: f32[1,32], index: 6, kind: input, shape index: {}]   ;;  %s791_s7 = inlined_call_operand.hbm [shape: f32[32,32], index: 7, kind: input, shape index: {}]   ;;  %s792_s8 = inlined_call_operand.vmem [shape: f32[1,32], index: 8, kind: input, shape index: {}]   ;;  %s793_s9 = inlined_call_operand.hbm [shape: f32[8,32], index: 9, kind: output, shape index: {}]  }
   0x1   :  { %15 = vsyncpa [#allocation6], 0 }
   0x2   :  { %16 = vsyncpa [#allocation9], 0 }
   0x3   :  { %17 = vsyncpa [#allocation4], 0  ;;  %s621_s30 = smov [#allocation5]   ;;  %s481_s13 = scalar_lea.hbm %s785_s1, 128 }
   0x4   :  { %s34_s10 = sshll.u32 %s621_s30, 4  ;;  %p482_p0 = scmp.ne.s32.totalorder %s785_s1, %s481_s13  ;;  %s35_s10 = int_to_ptr.vmem [resolvable:$true] %s34_s10 }
   0x5   :  { %p485_p1 = scmp.lt.u32.totalorder %s481_s13, %s785_s1 }
   0x7   :  { %p487_p2 = pnand %p485_p1, %p482_p0 }
   0x9   :  { %490 = shalt.err (!%p487_p2)
}
   0xa   :  { %s491_s18 = scalar_lea.vmem %s35_s10, 128  ;;  %p496_p4 = scmp.lt.s32.totalorder %s35_s10, %s35_s10 }
   0xb   :  { %p492_p3 = scmp.ne.s32.totalorder %s35_s10, %s491_s18  ;;  %p497_p5 = scmp.lt.s32.totalorder %s491_s18, %s491_s18 }
   0xd   :  { %p498_p6 = por %p497_p5, %p496_p4 }
   0xf   :  { %p499_p7 = pnand %p498_p6, %p492_p3 }
  0x11   :  { %502 = shalt.err (!%p499_p7)
}
  0x12   :  { %37 = dma.hbm_to_vmem [thread:$0]  %s785_s1, 128, %s35_s10, [#allocation6]  }
  0x13   :  { %s622_s21 = smov [#allocation8]   ;;  %s623_s23 = smov [#allocation2]  }
  0x14   :  { %s55_s22 = sshll.u32 %s622_s21, 4  ;;  %s24_s24 = sshll.u32 %s623_s23, 4  ;;  %s56_s22 = int_to_ptr.vmem [resolvable:$true] %s55_s22  ;;  %s25_s24 = int_to_ptr.vmem [resolvable:$true] %s24_s24 }
  0x15   :  { %s503_s27 = scalar_lea.hbm %s787_s3, 512 }
  0x16   :  { %p504_p8 = scmp.ne.s32.totalorder %s787_s3, %s503_s27  ;;  %p507_p9 = scmp.lt.u32.totalorder %s503_s27, %s787_s3 }
  0x18   :  { %p509_p10 = pnand %p507_p9, %p504_p8 }
  0x1a   :  { %512 = shalt.err (!%p509_p10)
}
  0x1b   :  { %s513_s1 = scalar_lea.vmem %s56_s22, 512  ;;  %p518_p12 = scmp.lt.s32.totalorder %s56_s22, %s56_s22 }
  0x1c   :  { %p514_p11 = scmp.ne.s32.totalorder %s56_s22, %s513_s1  ;;  %p519_p13 = scmp.lt.s32.totalorder %s513_s1, %s513_s1 }
  0x1e   :  { %p520_p0 = por %p519_p13, %p518_p12 }
  0x20   :  { %p521_p1 = pnand %p520_p0, %p514_p11 }
  0x22   :  { %524 = shalt.err (!%p521_p1)
}
  0x23   :  { %s624_s10 = smov 128   ;;  %s625_s12 = smov 8  }
  0x24   :  { %61 = dma.hbm_to_vmem [thread:$0]  %s787_s3, 512, %s56_s22, [#allocation9], %s624_s10, %s624_s10, %s625_s12  }
  0x25   :  { %s525_s17 = scalar_lea.hbm %s784_s0, 128 }
  0x26   :  { %p526_p2 = scmp.ne.s32.totalorder %s784_s0, %s525_s17  ;;  %p529_p3 = scmp.lt.u32.totalorder %s525_s17, %s784_s0 }
  0x28   :  { %p531_p4 = pnand %p529_p3, %p526_p2 }
  0x2a   :  { %534 = shalt.err (!%p531_p4)
}
  0x2b   :  { %s535_s23 = scalar_lea.vmem %s25_s24, 128  ;;  %p540_p6 = scmp.lt.s32.totalorder %s25_s24, %s25_s24 }
  0x2c   :  { %p536_p5 = scmp.ne.s32.totalorder %s25_s24, %s535_s23  ;;  %p541_p7 = scmp.lt.s32.totalorder %s535_s23, %s535_s23 }
  0x2e   :  { %p542_p8 = por %p541_p7, %p540_p6 }
  0x30   :  { %p543_p9 = pnand %p542_p8, %p536_p5 }
  0x32   :  { %546 = shalt.err (!%p543_p9)
}
  0x33   :  { %27 = dma.hbm_to_vmem [thread:$0]  %s784_s0, 128, %s25_s24, [#allocation3]  }
  0x34   :  { %s626_s25 = smov [#allocation7]   ;;  %s627_s27 = smov [#allocation10]  }
  0x35   :  { %s43_s26 = sshll.u32 %s626_s25, 4  ;;  %s73_s28 = sshll.u32 %s627_s27, 4  ;;  %s44_s26 = int_to_ptr.vmem [resolvable:$true] %s43_s26  ;;  %s74_s28 = int_to_ptr.vmem [resolvable:$true] %s73_s28 }
  0x36   :  { %s547_s11 = scalar_lea.hbm %s786_s2, 512 }
  0x37   :  { %p548_p10 = scmp.ne.s32.totalorder %s786_s2, %s547_s11  ;;  %p551_p11 = scmp.lt.u32.totalorder %s547_s11, %s786_s2 }
  0x39   :  { %p553_p12 = pnand %p551_p11, %p548_p10 }
  0x3b   :  { %556 = shalt.err (!%p553_p12)
}
  0x3c   :  { %s557_s0 = scalar_lea.vmem %s44_s26, 512  ;;  %p562_p0 = scmp.lt.s32.totalorder %s44_s26, %s44_s26 }
  0x3d   :  { %p558_p13 = scmp.ne.s32.totalorder %s44_s26, %s557_s0  ;;  %p563_p1 = scmp.lt.s32.totalorder %s557_s0, %s557_s0 }
  0x3f   :  { %p564_p2 = por %p563_p1, %p562_p0 }
  0x41   :  { %p565_p3 = pnand %p564_p2, %p558_p13 }
  0x43   :  { %568 = shalt.err (!%p565_p3)
}
  0x44   :  { %49 = dma.hbm_to_vmem [thread:$0]  %s786_s2, 512, %s44_s26, [#allocation6], %s624_s10, %s624_s10, %s625_s12  }
  0x45   :  { %s569_s19 = scalar_lea.hbm %s791_s7, 512 }
  0x46   :  { %p570_p4 = scmp.ne.s32.totalorder %s791_s7, %s569_s19  ;;  %p573_p5 = scmp.lt.u32.totalorder %s569_s19, %s791_s7 }
  0x48   :  { %p575_p6 = pnand %p573_p5, %p570_p4 }
  0x4a   :  { %578 = shalt.err (!%p575_p6)
}
  0x4b   :  { %s579_s22 = scalar_lea.vmem %s74_s28, 512  ;;  %p584_p8 = scmp.lt.s32.totalorder %s74_s28, %s74_s28 }
  0x4c   :  { %p580_p7 = scmp.ne.s32.totalorder %s74_s28, %s579_s22  ;;  %p585_p9 = scmp.lt.s32.totalorder %s579_s22, %s579_s22 }
  0x4e   :  { %p586_p10 = por %p585_p9, %p584_p8 }
  0x50   :  { %p587_p11 = pnand %p586_p10, %p580_p7 }
  0x52   :  { %590 = shalt.err (!%p587_p11)
}
  0x53   :  { %79 = dma.hbm_to_vmem [thread:$0]  %s791_s7, 512, %s74_s28, [#allocation9], %s624_s10, %s624_s10, %s625_s12  }
  0x54   :  { %613 = dma.done.wait [#allocation3], 128  }
  0x55   :  { %614 = vsyncadd [#allocation3], 4294967168 }
  0x56   :  { %615 = dma.done.wait [#allocation6], 640  }
  0x57   :  { %616 = vsyncadd [#allocation6], 4294966656 }
  0x58   :  { %617 = dma.done.wait [#allocation9], 1024  }
  0x59   :  { %618 = vsyncadd [#allocation9], 4294966272  ;;  %v628_v0 = vmov 0.0|0.0   ;;  %vm629_vm0 = vmmov 0   ;;  %v630_v1 = vmov 0.0   ;;  %v98_v2 = vld [vmem:[#allocation7] sm:$0xff] }
  0x5a   :  { %450 = vmatprep.subr.bf16.mxu0 %v628_v0  ;;  %425 = vmatprep.mubr.msk.f32.mxu0 %vm629_vm0, %v630_v1  ;;  %v99_v3 = vld [vmem:[#allocation7 + $0x8] sm:$0xff]  ;;  %v100_v4 = vld [vmem:[#allocation7 + $0x10] sm:$0xff]  ;;  %v101_v6 = vld [vmem:[#allocation7 + $0x18] sm:$0xff]  ;;  %vm103_vm1 = vcmask 261120   ;;  %s631_s30 = smov [#allocation11]  }
  0x5b   :  { %456 = vmatprep.subr.bf16.mxu1 %v628_v0  ;;  %436 = vmatprep.mubr.msk.f32.mxu1 %vm629_vm0, %v630_v1  ;;  %v451_v5 = vpack.c.bf16 %v99_v3, %v98_v2  ;;  %v178_v7 = vld [vmem:[#allocation8] sm:$0xff]  ;;  %v179_v8 = vld [vmem:[#allocation8 + $0x8] sm:$0xff]  ;;  %v454_v9 = vpack.c.bf16 %v101_v6, %v100_v4  ;;  %v97_v11 = vld [vmem:[#allocation2] sm:$0xff]  ;;  %s384_s11 = sshll.u32 %s631_s30, 4  ;;  %s385_s11 = int_to_ptr.vmem [resolvable:$true] %s384_s11 }
  0x5c   :  { %v457_v10 = vpack.c.bf16 %v179_v8, %v178_v7  ;;  %v180_v12 = vld [vmem:[#allocation8 + $0x10] sm:$0xff]  ;;  %v181_v13 = vld [vmem:[#allocation8 + $0x18] sm:$0xff]  ;;  %v293_v30 = vld [vmem:[#allocation10] sm:$0xff]  ;;  %p596_p13 = scmp.lt.s32.totalorder %s385_s11, %s385_s11 }
  0x5d   :  { %452 = vmatpush3.bf16.msra.mxu0 %v451_v5  ;;  %v460_v14 = vpack.c.bf16 %v181_v13, %v180_v12  ;;  %v102_v15 = vld [vmem:[#allocation5] sm:$0xff]  ;;  %v396_v20 = vld [vmem:[%s788_s4] ss:$0 sm:$0xff]  ;;  %v294_v31 = vld [vmem:[#allocation10 + $0x8] sm:$0xff] }
  0x5e   :  { %453 = vmatprep.subr.bf16.mxu0 %v628_v0  ;;  %458 = vmatpush3.bf16.msra.mxu1 %v457_v10  ;;  %v463_v32 = vpack.c.bf16 %v294_v31, %v293_v30  ;;  %v295_v33 = vld [vmem:[#allocation10 + $0x10] sm:$0xff]  ;;  %v296_v34 = vld [vmem:[#allocation10 + $0x18] sm:$0xff] }
  0x5f   :  { %459 = vmatprep.subr.bf16.mxu1 %v628_v0  ;;  %v466_v35 = vpack.c.bf16 %v296_v34, %v295_v33  ;;  %v398_v40 = vld [vmem:[%s789_s5] ss:$0 sm:$0xff]  ;;  %s591_s5 = scalar_lea.vmem %s385_s11, 128 }
  0x60   :  { %v399_v42 = vld [vmem:[%s790_s6] ss:$0 sm:$0xff]  ;;  %p592_p12 = scmp.ne.s32.totalorder %s385_s11, %s591_s5  ;;  %p597_p0 = scmp.lt.s32.totalorder %s591_s5, %s591_s5 }
  0x61   :  { %455 = vmatpush3.bf16.msra.mxu0 %v454_v9  ;;  %v400_v46 = vld [vmem:[%s792_s8] ss:$0 sm:$0xff] }
  0x62   :  { %462 = vmatprep.subr.bf16.mxu0 %v628_v0  ;;  %461 = vmatpush3.bf16.msra.mxu1 %v460_v14  ;;  %p598_p1 = por %p597_p0, %p596_p13 }
  0x64   :  { %426 = vmatmul.mubr.msk.f32.vlgmr.msra.gmra.mrb[0].mxu0 %vm103_vm1, %v97_v11  ;;  %p599_p2 = pnand %p598_p1, %p592_p12 }
  0x65   :  { %447 = vmatprep.mubr.msk.f32.mxu0 %vm629_vm0, %v630_v1  ;;  %464 = vmatpush3.bf16.msra.mxu0 %v463_v32 }
  0x66   :  { %465 = vmatprep.subr.bf16.mxu0 %v628_v0 }
  0x69   :  { %467 = vmatpush3.bf16.msra.mxu0 %v466_v35 }
 0x137   :  { %v173_v16 = vpop.f32.mrb[0].mxu0 }
 0x138   :  { %v174_v17 = vadd.f32 %v173_v16, %v102_v15  ;;  %v427_v18 = vpop.f32.mrb[1].mxu0 }
 0x13a   :  { %v177_v19 = vmax.f32 %v174_v17, 0.0 }
 0x13c   :  { %437 = vmatmul.mubr.msk.f32.vlgmr.msra.gmra.mrb[0].mxu1 %vm103_vm1, %v177_v19 }
 0x20f   :  { %v258_v21 = vpop.f32.mrb[0].mxu1 }
 0x210   :  { %v259_v22 = vadd.f32 %v396_v20, %v258_v21  ;;  %v438_v23 = vpop.f32.mrb[1].mxu1 }
 0x212   :  { %v262_v24 = vsel %vm103_vm1, %v259_v22, 0.0 }
 0x213   :  { %263 = vadd.xlane.f32.xlu0 %v262_v24 }
 0x2a0   :  { %v264_v25 = vpop.xlane.xlu0 %263 }
 0x2a1   :  { %v266_v26 = vmul.f32 0.03125, %v264_v25 }
 0x2a3   :  { %v267_v27 = vsub.f32 %v259_v22, %v266_v26 }
 0x2a5   :  { %v268_v28 = vmul.f32 %v267_v27, %v267_v27 }
 0x2a7   :  { %v269_v29 = vsel %vm103_vm1, %v268_v28, 0.0 }
 0x2a8   :  { %270 = vadd.xlane.f32.xlu0 %v269_v29 }
 0x335   :  { %v271_v36 = vpop.xlane.xlu0 %270 }
 0x336   :  { %v272_v37 = vmul.f32 0.03125, %v271_v36 }
 0x338   :  { %v273_v38 = vadd.f32 1e-05, %v272_v37 }
 0x33a   :  { %479 = vrsqrt.f32 %v273_v38 }
 0x344   :  { %v480_v39 = vpop.eup %479 }
 0x345   :  { %v275_v41 = vmul.f32 %v480_v39, %v267_v27 }
 0x347   :  { %v283_v43 = vmul.f32 %v398_v40, %v275_v41 }
 0x349   :  { %v291_v44 = vadd.f32 %v399_v42, %v283_v43 }
 0x34b   :  { %v292_v45 = vmax.f32 %v291_v44, 0.0 }
 0x34d   :  { %448 = vmatmul.mubr.msk.f32.vlgmr.msra.gmra.mrb[2].mxu0 %vm103_vm1, %v292_v45 }
 0x420   :  { %v373_v47 = vpop.f32.mrb[2].mxu0 }
 0x421   :  { %v374_v48 = vadd.f32 %v400_v46, %v373_v47  ;;  %v449_v49 = vpop.f32.mrb[3].mxu0 }
 0x423   :  { %377 = vst.msk [vmem:[#allocation11] sm:$0xff] %vm103_vm1, %v374_v48 }
 0x424   :  { %602 = shalt.err (!%p599_p2)
}
 0x425   :  { %s603_s13 = scalar_lea.hbm %s793_s9, 128 }
 0x426   :  { %p604_p3 = scmp.ne.s32.totalorder %s793_s9, %s603_s13  ;;  %p607_p4 = scmp.lt.u32.totalorder %s603_s13, %s793_s9 }
 0x428   :  { %p609_p5 = pnand %p607_p4, %p604_p3 }
 0x42a   :  { %612 = shalt.err (!%p609_p5)
}
 0x42b   :  { %387 = dma.vmem_to_hbm [thread:$0]  %s385_s11, 128, %s793_s9, [#allocation4]  }
 0x42c   :  { %619 = dma.done.wait [#allocation4], 128  }
 0x42d   :  { %620 = vsyncadd [#allocation4], 4294967168 }
 0x42e   :  { %391 = vsyncpa [#allocation3], 1 }
 0x42f   :  { %392 = vsyncpa [#allocation6], 1 }
 0x430   :  { %393 = vsyncpa [#allocation9], 1 }
 0x431   :  { %394 = vsyncpa [#allocation4], 1 }

</bundles_post_ra>
